<compile_context>
chip_gen: v5e
topology: v5e:2x2
jax: 0.10.0
libtpu: 0.0.40
codegen_flags: <defaults>
</compile_context>

<pallas_src>
from typing import NamedTuple

import jax
import jax.numpy as jnp
from jax.experimental import pallas as pl
from jax.experimental.pallas import tpu as pltpu


def _round_up(x, m):
    return (x + m - 1) // m * m


def _sublane_multiple(dtype):
    # Minimum second-to-last-dim tile: f32 -> 8, bf16 -> 16, int8/fp8 -> 32.
    return {4: 8, 2: 16, 1: 32}[jnp.dtype(dtype).itemsize]


def _fc_kernel_acc(x_ref, w_ref, b_ref, o_ref, acc_ref):
    """One (tm, tn) output tile; grid axis 2 is the K reduction.

    x_ref:   (tm, tk)       activation tile (compute dtype)
    w_ref:   (tk, tn)       weight tile, pre-transposed (K, N) layout
    b_ref:   (1, tn) f32    bias tile
    o_ref:   (tm, tn)       output tile (non-f32 dtype)
    acc_ref: (tm, tn) f32   VMEM accumulator (persists across K steps)
    """
    k = pl.program_id(2)

    @pl.when(k == 0)
    def _():
        acc_ref[...] = jnp.zeros_like(acc_ref)

    acc_ref[...] += jnp.dot(x_ref[...], w_ref[...],
                            preferred_element_type=jnp.float32)

    @pl.when(k == pl.num_programs(2) - 1)
    def _():
        o_ref[...] = (acc_ref[...] + b_ref[...]).astype(o_ref.dtype)


def _fc_kernel_inplace(x_ref, w_ref, b_ref, o_ref):
    """f32-output variant: accumulate directly into the output tile.

    The output block index (i, j) is constant across the k axis, so o_ref is
    VMEM-resident for the whole reduction; this saves the separate f32
    scratch and the final copy sweep.
    """
    k = pl.program_id(2)

    @pl.when(k == 0)
    def _():
        o_ref[...] = jnp.zeros_like(o_ref)

    o_ref[...] += jnp.dot(x_ref[...], w_ref[...],
                          preferred_element_type=jnp.float32)

    @pl.when(k == pl.num_programs(2) - 1)
    def _():
        o_ref[...] += b_ref[...]


class FCParams(NamedTuple):
    w_t: jax.Array   # (k_p, n_p) pre-transposed, padded weight (compute dtype)
    b2d: jax.Array   # (1, n_p) float32 bias
    n_out: int
    k_in: int
    tn: int
    tk: int


def prepare_fc_params(weight, bias, *, tn_max=512, tk_max=1024,
                      compute_dtype=None):
    """One-time (hoistable) parameter layout:

    * transpose W to (K, N) so the kernel uses the standard MXU contraction
      (no per-tile XLU transpose),
    * zero-pad to tile multiples (zeros along K contribute nothing),
    * optionally cast to a bf16 compute dtype (halves weight HBM traffic).
    """
    n_out, k_in = weight.shape
    tn = min(tn_max, _round_up(n_out, 128))
    tk = min(tk_max, _round_up(k_in, 128))
    n_p = _round_up(n_out, tn)
    k_p = _round_up(k_in, tk)

    w_t = weight.T  # (k_in, n_out)
    if (k_p, n_p) != (k_in, n_out):
        w_t = jnp.pad(w_t, ((0, k_p - k_in), (0, n_p - n_out)))
    if compute_dtype is not None:
        w_t = w_t.astype(compute_dtype)

    b2d = bias.astype(jnp.float32).reshape((1, n_out))
    if n_p != n_out:
        b2d = jnp.pad(b2d, ((0, 0), (0, n_p - n_out)))

    return FCParams(w_t, b2d, n_out, k_in, tn, tk)


def fc_forward_prepared(x, params, *, tm_max=512, w_buffers=2, out_dtype=None):
    """Equivalent of torch.nn.Linear(in, out)(x) given prepared params.

    x: (..., in_features) -> (..., out_features)
    """
    n_out, k_in = params.n_out, params.k_in
    assert x.shape[-1] == k_in
    lead_shape = x.shape[:-1]
    out_dtype = out_dtype or x.dtype
    compute_dtype = params.w_t.dtype

    x2d = x.reshape((-1, k_in))
    m = x2d.shape[0]

    # Dtype-aware M tile (8 f32 / 16 bf16 / 32 int8-fp8 sublane packing).
    sub = _sublane_multiple(compute_dtype)
    tm = min(tm_max, _round_up(m, sub))
    tn, tk = params.tn, params.tk

    m_p = _round_up(m, tm)
    k_p, n_p = params.w_t.shape

    # v7x megacore: keep >= 2 blocks on the parallel (i, j) axes so both
    # TensorCores get work; shrink tn while it stays a 128-multiple dividing
    # n_p (n_p is a multiple of the original tn).
    while (m_p // tm) * (n_p // tn) < 2 and tn % 256 == 0:
        tn //= 2
    # TODO(synk): if the parallel extent is still 1 (tiny M and N<=128), one
    # v7x core idles; splitting K across cores needs an extra combine pass.

    # Per-call activation padding only (weight/bias padding was hoisted).
    if (m_p, k_p) != (m, k_in):
        x2d = jnp.pad(x2d, ((0, m_p - m), (0, k_p - k_in)))
    if x2d.dtype != compute_dtype:
        x2d = x2d.astype(compute_dtype)

    grid = (m_p // tm, n_p // tn, k_p // tk)

    x_item = jnp.dtype(compute_dtype).itemsize
    o_item = jnp.dtype(out_dtype).itemsize

    # Include re-streaming: W is fetched (m_p/tm) times, x (n_p/tn) times.
    cost = pl.CostEstimate(
        flops=2 * m * n_out * k_in,
        transcendentals=0,
        bytes_accessed=(grid[1] * m_p * k_p * x_item      # x, re-streamed per j
                        + grid[0] * n_p * k_p * x_item    # W, re-streamed per i
                        + n_p * 4                         # bias
                        + m_p * n_p * o_item))            # output

    # Explicit VMEM budget from the actual buffer math (double-buffered x/W/
    # bias/out + f32 accumulator) with 2x headroom, capped at v7x's 64 MiB/TC.
    n_wbuf = max(2, w_buffers)
    vmem_bytes = (2 * tm * tk * x_item + n_wbuf * tk * tn * x_item
                  + 2 * tn * 4 + 2 * tm * tn * o_item + tm * tn * 4)
    vmem_limit = int(min(64 * 2**20, max(32 * 2**20, 2 * vmem_bytes)))

    # Optional deeper pipelining on the weight stream (weight-BW-bound shapes).
    w_spec_kwargs = {}
    if w_buffers > 2:
        w_spec_kwargs["pipeline_mode"] = pl.Buffered(w_buffers)

    in_specs = [
        pl.BlockSpec((tm, tk), lambda i, j, k: (i, k)),                    # x
        pl.BlockSpec((tk, tn), lambda i, j, k: (k, j), **w_spec_kwargs),   # W^T
        pl.BlockSpec((1, tn), lambda i, j, k: (0, j)),                     # bias
    ]
    out_spec = pl.BlockSpec((tm, tn), lambda i, j, k: (i, j))

    if jnp.dtype(out_dtype) == jnp.float32:
        kernel, scratch = _fc_kernel_inplace, []
    else:
        kernel, scratch = _fc_kernel_acc, [pltpu.VMEM((tm, tn), jnp.float32)]

    out = pl.pallas_call(
        kernel,
        out_shape=jax.ShapeDtypeStruct((m_p, n_p), out_dtype),
        grid=grid,
        in_specs=in_specs,
        out_specs=out_spec,
        scratch_shapes=scratch,
        compiler_params=pltpu.CompilerParams(
            dimension_semantics=("parallel", "parallel", "arbitrary"),
            vmem_limit_bytes=vmem_limit),
        cost_estimate=cost,
    )(x2d, params.w_t, params.b2d)

    if (m_p, n_p) != (m, n_out):
        out = out[:m, :n_out]
    return out.reshape(lead_shape + (n_out,))


def fc_forward(x, weight, bias, *, tm_max=512, tn_max=512, tk_max=1024,
               compute_dtype=None, w_buffers=2):
    """Convenience wrapper (prepares params per call; hoist prepare_fc_params
    to parameter-setup time in real use)."""
    params = prepare_fc_params(weight, bias, tn_max=tn_max, tk_max=tk_max,
                               compute_dtype=compute_dtype)
    return fc_forward_prepared(x, params, tm_max=tm_max, w_buffers=w_buffers,
                               out_dtype=x.dtype)


def _make_linear_params(key, in_channels, out_channels, dtype=jnp.float32):
    # Mimics nn.Linear's uniform(-1/sqrt(K), 1/sqrt(K)) init, deterministically.
    kw, kb = jax.random.split(key)
    bound = 1.0 / (in_channels ** 0.5)
    weight = jax.random.uniform(
        kw, (out_channels, in_channels), minval=-bound, maxval=bound,
        dtype=dtype)
    bias = jax.random.uniform(
        kb, (out_channels,), minval=-bound, maxval=bound, dtype=dtype)
    return weight, bias


if __name__ == "__main__":
    key = jax.random.PRNGKey(0)
    k1, k2, k3, k4, k5 = jax.random.split(key, 5)

    # Case 1: small 2-D input (batch=8, 32 -> 32); params prepared once and
    # reused (the hoisted-layout path).
    batch, in_ch, out_ch = 8, 32, 32
    x = jax.random.normal(k1, (batch, in_ch), dtype=jnp.float32)
    weight, bias = _make_linear_params(k2, in_ch, out_ch)
    params = prepare_fc_params(weight, bias)
    y = fc_forward_prepared(x, params)
    jax.block_until_ready(y)
    y_ref = x @ weight.T + bias
    assert y.shape == (batch, out_ch)
    assert jnp.allclose(y, y_ref, atol=1e-5, rtol=1e-5)

    # Case 2: leading batch dims + M-padding path (M=10 -> padded to 16),
    # reusing the same prepared params.
    x3 = jax.random.normal(k3, (2, 5, in_ch), dtype=jnp.float32)
    y3 = fc_forward_prepared(x3, params)
    jax.block_until_ready(y3)
    y3_ref = x3 @ weight.T + bias
    assert y3.shape == (2, 5, out_ch)
    assert jnp.allclose(y3, y3_ref, atol=1e-5, rtol=1e-5)

    # Case 3: multi-block N and multi-step K reduction (exercises the
    # init/finalize accumulation and bias-added-exactly-once semantics).
    in_big, out_big, m_big = 300, 512, 16
    xb = jax.random.normal(k4, (m_big, in_big), dtype=jnp.float32)
    wb, bb = _make_linear_params(k5, in_big, out_big)
    yb = fc_forward(xb, wb, bb, tm_max=16, tn_max=256, tk_max=128)
    jax.block_until_ready(yb)
    yb_ref = xb @ wb.T + bb
    assert yb.shape == (m_big, out_big)
    assert jnp.allclose(yb, yb_ref, atol=1e-4, rtol=1e-4)

    # Case 4: bf16 operands with f32 accumulation (bf16-native MXU path +
    # halved weight HBM traffic); also exercises the megacore tn split.
    yb16 = fc_forward(xb, wb, bb, compute_dtype=jnp.bfloat16)
    jax.block_until_ready(yb16)
    assert yb16.shape == (m_big, out_big)
    assert jnp.allclose(yb16, yb_ref, atol=5e-2, rtol=5e-2)

    print("KERNEL_OK")
</pallas_src>

<mosaic_0001>
module attributes {stable_mosaic.version = 11 : i64} {
  func.func @_fc_kernel_inplace(%arg0: i32, %arg1: i32, %arg2: i32, %arg3: memref<8x128xf32, #tpu.memory_space<vmem>>, %arg4: memref<128x128xf32, #tpu.memory_space<vmem>>, %arg5: memref<1x128xf32, #tpu.memory_space<vmem>>, %arg6: memref<8x128xf32, #tpu.memory_space<vmem>>) attributes {dimension_semantics = [#tpu.dimension_semantics<parallel>, #tpu.dimension_semantics<parallel>, #tpu.dimension_semantics<arbitrary>], iteration_bounds = array<i64: 1, 1, 1>, scalar_prefetch = 0 : i64, scratch_operands = 0 : i64, tpu.core_type = #tpu.core_type<tc>, window_params = [{transform_indices = @transform_0, window_bounds = array<i64: 8, 128>}, {transform_indices = @transform_1, window_bounds = array<i64: 128, 128>}, {transform_indices = @transform_2, window_bounds = array<i64: 1, 128>}, {transform_indices = @transform_3, window_bounds = array<i64: 8, 128>}]} {
    %c0_i32 = arith.constant 0 : i32
    %0 = arith.cmpi eq, %arg2, %c0_i32 : i32
    %1 = arith.extui %0 : i1 to i32
    %c0_i32_0 = arith.constant 0 : i32
    %2 = arith.cmpi ne, %1, %c0_i32_0 : i32
    scf.if %2 {
      %cst_10 = arith.constant 0.000000e+00 : f32
      %12 = vector.broadcast %cst_10 : f32 to vector<8x128xf32>
      %c0_11 = arith.constant 0 : index
      %c0_12 = arith.constant 0 : index
      %13 = vector.load %arg6[%c0_11, %c0_12] : memref<8x128xf32, #tpu.memory_space<vmem>>, vector<8x128xf32>
      tpu.vector_store %arg6[%c0_11, %c0_12], %12 {strides = array<i32>} : memref<8x128xf32, #tpu.memory_space<vmem>>, vector<8x128xf32>,
    } else {
    }
    %c0 = arith.constant 0 : index
    %c0_1 = arith.constant 0 : index
    %3 = vector.load %arg6[%c0, %c0_1] : memref<8x128xf32, #tpu.memory_space<vmem>>, vector<8x128xf32>
    %c0_2 = arith.constant 0 : index
    %c0_3 = arith.constant 0 : index
    %4 = vector.load %arg3[%c0_2, %c0_3] : memref<8x128xf32, #tpu.memory_space<vmem>>, vector<8x128xf32>
    %c0_4 = arith.constant 0 : index
    %c0_5 = arith.constant 0 : index
    %5 = vector.load %arg4[%c0_4, %c0_5] : memref<128x128xf32, #tpu.memory_space<vmem>>, vector<128x128xf32>
    %cst = arith.constant dense<0.000000e+00> : vector<8x128xf32>
    %6 = tpu.matmul %4, %5, %cst {dimension_numbers = #tpu.dot_dimension_numbers<[1], [0], [0], [1], [0, 0, 1, 1], [], []>} : vector<8x128xf32>, vector<128x128xf32>, vector<8x128xf32> -> vector<8x128xf32>
    %7 = arith.addf %3, %6 : vector<8x128xf32>
    %c0_6 = arith.constant 0 : index
    %c0_7 = arith.constant 0 : index
    %8 = vector.load %arg6[%c0_6, %c0_7] : memref<8x128xf32, #tpu.memory_space<vmem>>, vector<8x128xf32>
    tpu.vector_store %arg6[%c0_6, %c0_7], %7 {strides = array<i32>} : memref<8x128xf32, #tpu.memory_space<vmem>>, vector<8x128xf32>,
    %c0_i32_8 = arith.constant 0 : i32
    %9 = arith.cmpi eq, %arg2, %c0_i32_8 : i32
    %10 = arith.extui %9 : i1 to i32
    %c0_i32_9 = arith.constant 0 : i32
    %11 = arith.cmpi ne, %10, %c0_i32_9 : i32
    scf.if %11 {
      %c0_10 = arith.constant 0 : index
      %c0_11 = arith.constant 0 : index
      %12 = vector.load %arg6[%c0_10, %c0_11] : memref<8x128xf32, #tpu.memory_space<vmem>>, vector<8x128xf32>
      %c0_12 = arith.constant 0 : index
      %c0_13 = arith.constant 0 : index
      %13 = vector.load %arg5[%c0_12, %c0_13] : memref<1x128xf32, #tpu.memory_space<vmem>>, vector<1x128xf32>
      %14 = vector.broadcast %13 : vector<1x128xf32> to vector<8x128xf32>
      %15 = arith.addf %12, %14 : vector<8x128xf32>
      %c0_14 = arith.constant 0 : index
      %c0_15 = arith.constant 0 : index
      %16 = vector.load %arg6[%c0_14, %c0_15] : memref<8x128xf32, #tpu.memory_space<vmem>>, vector<8x128xf32>
      tpu.vector_store %arg6[%c0_14, %c0_15], %15 {strides = array<i32>} : memref<8x128xf32, #tpu.memory_space<vmem>>, vector<8x128xf32>,
    } else {
    }
    return
  }
  func.func @transform_0(%arg0: i32, %arg1: i32, %arg2: i32) -> (i32, i32) {
    %c0_i32 = arith.constant 0 : i32
    return %arg0, %arg2 : i32, i32
  }
  func.func @transform_1(%arg0: i32, %arg1: i32, %arg2: i32) -> (i32, i32) {
    %c0_i32 = arith.constant 0 : i32
    return %arg2, %arg1 : i32, i32
  }
  func.func @transform_2(%arg0: i32, %arg1: i32, %arg2: i32) -> (i32, i32) {
    %c0_i32 = arith.constant 0 : i32
    %c0_i32_0 = arith.constant 0 : i32
    return %c0_i32, %arg1 : i32, i32
  }
  func.func @transform_3(%arg0: i32, %arg1: i32, %arg2: i32) -> (i32, i32) {
    %c0_i32 = arith.constant 0 : i32
    return %arg0, %arg1 : i32, i32
  }
}

</mosaic_0001>

<bundles_post_ra>
// kernel: tpu_custom_call.1
= control target key start
LH: loop header
LB: loop body
LE: loop exit
PB: predicated region body
PF: predicated region fallthrough
CT: control target
= control target key end

     0   :  { %8 = vsyncpa [#allocation3], 0  ;;  %s240_s0 = inlined_call_operand.hbm [shape: f32[8,128], index: 0, kind: input, shape index: {}]   ;;  %s241_s1 = inlined_call_operand.hbm [shape: f32[128,128], index: 1, kind: input, shape index: {}]   ;;  %s242_s2 = inlined_call_operand.vmem [shape: f32[1,128], index: 2, kind: input, shape index: {}]   ;;  %s243_s3 = inlined_call_operand.hbm [shape: f32[8,128], index: 3, kind: output, shape index: {}]  }
   0x1   :  { %9 = vsyncpa [#allocation6], 0 }
   0x2   :  { %10 = vsyncpa [#allocation4], 0  ;;  %s16_s14 = sshll.u32 %s240_s0, 4  ;;  %s203_s15 = smov [#allocation2]   ;;  %s17_s14 = int_to_ptr.hbm [resolvable:$true] %s16_s14 }
   0x3   :  { %s18_s16 = sshll.u32 %s203_s15, 4  ;;  %s26_s19 = sshll.u32 %s241_s1, 4  ;;  %s19_s16 = int_to_ptr.vmem [resolvable:$true] %s18_s16  ;;  %s27_s19 = int_to_ptr.hbm [resolvable:$true] %s26_s19 }
   0x4   :  { %21 = dma.hbm_to_vmem [thread:$0]  %s17_s14, 128, %s19_s16, [#allocation3]  }
   0x5   :  { %s204_s20 = smov [#allocation5]   ;;  %s205_s22 = smov 128  }
   0x6   :  { %s28_s21 = sshll.u32 %s204_s20, 4  ;;  %s206_s23 = smov 8   ;;  %s29_s21 = int_to_ptr.vmem [resolvable:$true] %s28_s21 }
   0x7   :  { %34 = dma.hbm_to_vmem [thread:$0]  %s27_s19, 2048, %s29_s21, [#allocation6], %s205_s22, %s205_s22, %s206_s23  }
   0x8   :  { %197 = dma.done.wait [#allocation3], 128  }
   0x9   :  { %198 = vsyncadd [#allocation3], 4294967168 }
   0xa   :  { %199 = dma.done.wait [#allocation6], 2048  }
   0xb   :  { %200 = vsyncadd [#allocation6], 4294965248  ;;  %v67_v0 = vld [vmem:[#allocation5 + $0x78] sm:$0xff]  ;;  %v66_v1 = vld [vmem:[#allocation5 + $0x70] sm:$0xff]  ;;  %s207_s24 = smov [#allocation7]   ;;  %s107_s28 = sshll.u32 %s243_s3, 4  ;;  %s108_s28 = int_to_ptr.hbm [resolvable:$true] %s107_s28 }
   0xc   :  { %68 = vmatpush.msra.mxu0 %v67_v0  ;;  %v65_v2 = vld [vmem:[#allocation5 + $0x68] sm:$0xff]  ;;  %v64_v3 = vld [vmem:[#allocation5 + $0x60] sm:$0xff]  ;;  %v63_v4 = vld [vmem:[#allocation5 + $0x58] sm:$0xff]  ;;  %s105_s25 = sshll.u32 %s207_s24, 4  ;;  %s106_s25 = int_to_ptr.vmem [resolvable:$true] %s105_s25 }
   0xd   :  { %v62_v5 = vld [vmem:[#allocation5 + $0x50] sm:$0xff]  ;;  %v61_v6 = vld [vmem:[#allocation5 + $0x48] sm:$0xff]  ;;  %v60_v7 = vld [vmem:[#allocation5 + $0x40] sm:$0xff] }
   0xe   :  { %69 = vmatpush.msra.mxu0 %v66_v1  ;;  %v59_v8 = vld [vmem:[#allocation5 + $0x38] sm:$0xff]  ;;  %v58_v9 = vld [vmem:[#allocation5 + $0x30] sm:$0xff]  ;;  %v57_v10 = vld [vmem:[#allocation5 + $0x28] sm:$0xff] }
   0xf   :  { %v56_v11 = vld [vmem:[#allocation5 + $0x20] sm:$0xff]  ;;  %v55_v12 = vld [vmem:[#allocation5 + $0x18] sm:$0xff]  ;;  %v54_v13 = vld [vmem:[#allocation5 + $0x10] sm:$0xff] }
  0x10   :  { %70 = vmatpush.msra.mxu0 %v65_v2  ;;  %v53_v14 = vld [vmem:[#allocation5 + $0x8] sm:$0xff]  ;;  %v52_v15 = vld [vmem:[#allocation5] sm:$0xff]  ;;  %v51_v16 = vld [vmem:[#allocation2] sm:$0xff] }
  0x11   :  { %v124_v17 = vld [vmem:[%s242_s2] ss:$0 sm:$0xff] }
  0x12   :  { %71 = vmatpush.msra.mxu0 %v64_v3 }
  0x14   :  { %72 = vmatpush.msra.mxu0 %v63_v4 }
  0x16   :  { %73 = vmatpush.msra.mxu0 %v62_v5 }
  0x18   :  { %74 = vmatpush.msra.mxu0 %v61_v6 }
  0x1a   :  { %75 = vmatpush.msra.mxu0 %v60_v7 }
  0x1c   :  { %76 = vmatpush.msra.mxu0 %v59_v8 }
  0x1e   :  { %77 = vmatpush.msra.mxu0 %v58_v9 }
  0x20   :  { %78 = vmatpush.msra.mxu0 %v57_v10 }
  0x22   :  { %79 = vmatpush.msra.mxu0 %v56_v11 }
  0x24   :  { %80 = vmatpush.msra.mxu0 %v55_v12 }
  0x26   :  { %81 = vmatpush.msra.mxu0 %v54_v13 }
  0x28   :  { %82 = vmatpush.msra.mxu0 %v53_v14 }
  0x2a   :  { %83 = vmatpush.msra.mxu0 %v52_v15 }
  0x2b   :  { %84 = vmatmul.f32.vlgmr.msra.gmra.mxu0 %v51_v16 }
  0xa8   :  { %v85_v18 = vpop.f32.mrf.mxu0 }
  0xa9   :  { %v98_v19 = vadd.f32 %v124_v17, %v85_v18 }
  0xab   :  { %99 = vst [vmem:[#allocation7] sm:$0xff] %v98_v19 }
  0xac   :  { %110 = dma.vmem_to_hbm [thread:$0]  %s106_s25, 128, %s108_s28, [#allocation4]  }
  0xad   :  { %201 = dma.done.wait [#allocation4], 128  }
  0xae   :  { %202 = vsyncadd [#allocation4], 4294967168 }
  0xaf   :  { %115 = vsyncpa [#allocation3], 1 }
  0xb0   :  { %116 = vsyncpa [#allocation6], 1 }
  0xb1   :  { %117 = vsyncpa [#allocation4], 1 }

</bundles_post_ra>
